<compile_context>
chip_gen: v7x
topology: tpu7x:2x2x1
jax: 0.10.0
libtpu: 0.0.40
codegen_flags: <defaults>
</compile_context>

<pallas_src>
import functools

import numpy as np

import jax
import jax.numpy as jnp
from jax import lax
from jax.experimental import pallas as pl
from jax.experimental.pallas import tpu as pltpu


def _round_up(v, m):
    return ((v + m - 1) // m) * m


# ------------------------------ Pallas kernel ---------------------------------

def _high_block_kernel(x_ref, w_ref, bmap_ref, o_ref, *, wp, so):
    """Fused bottleneck block on one zero-padded, vertically-stacked image frame.

    Layout: channels in sublanes, flattened padded spatial positions in lanes:
      x_ref    : (Cin,  Sp) f32   zero-padded tall frame
      w_ref    : (Cout, 9*Cin) bf16  effective (BN-folded, chain-collapsed) 3x3 conv
      bmap_ref : (Cout, So) f32   per-position bias (border-aware)
      o_ref    : (Cout, So) f32   So is a multiple of 128 (dense stores)
    """
    base = wp + 1                    # flat offset of output position 0 in the padded frame

    # bf16 cast ONCE, before the 9 lane-shifted slices (halves im2col vreg traffic).
    xb = x_ref[...].astype(jnp.bfloat16)                                    # (Cin, Sp)
    taps = jnp.concatenate(
        [xb[:, base + dh * wp + dw: base + dh * wp + dw + so]
         for dh in (-1, 0, 1) for dw in (-1, 0, 1)],
        axis=0)                                                             # (9*Cin, So)

    # Single MXU matmul for the whole conv/BN chain (f32 accumulation).
    y = jnp.dot(w_ref[...], taps, preferred_element_type=jnp.float32)       # (Cout, So)

    # Folded bias + ReLU, then f32 identity shortcut + final ReLU.
    y = jnp.maximum(y + bmap_ref[...], 0.0)
    o_ref[...] = jnp.maximum(y + x_ref[:, base:base + so], 0.0)


# ------------------------------ wrapper ----------------------------------------

def _default_images_per_step(n):
    """1 grid step on single-TensorCore chips; >=2 'parallel' steps on multi-TC chips."""
    try:
        kind = jax.devices()[0].device_kind.lower()
    except Exception:   # pragma: no cover - detection only affects tiling, not results
        kind = ""
    single_core = any(t in kind for t in
                      ("v5e", "v5 lite", "v5lite", "v6e", "v6 lite", "v6lite"))
    if single_core or n < 2:
        g = n
    else:
        g = max(1, n // 2)
    while n % g:
        g -= 1
    return max(g, 1)


def high_block_forward(x, params, images_per_step=None):
    """HighBlock forward. Input/output are NCHW (PyTorch layout); the kernel works on a
    channels-in-sublanes / flattened-spatial-in-lanes view, so no NCHW<->NHWC transposes."""
    n, cin, h, w = x.shape
    cout = params["w_eff"].shape[0]
    assert cin == cout, \
        "identity shortcut (shortcut=None) requires in_channel == out_channel * 4"

    g = images_per_step or _default_images_per_step(n)
    assert n % g == 0, "images_per_step must divide the batch size"
    ns = n // g

    wp = w + 2                              # W padded by 1 zero column on each side
    rows = g * (h + 1)                      # per image: h rows + 1 shared zero separator row
    so = _round_up((rows - 2) * wp + w, 128)      # lane-dense output extent (128 multiple)
    sp = _round_up(so + 2 * wp + 2, 128)          # covers the (+1,+1) tap of the last lane
    base = wp + 1

    # ---- assemble the vertically-stacked zero-padded frame (channels-major NCHW) ----
    xp = jnp.pad(x, ((0, 0), (0, 0), (0, 1), (1, 1)))          # (n, cin, h+1, wp)
    xp = xp.reshape(ns, g, cin, h + 1, wp).transpose(0, 2, 1, 3, 4)
    xp = xp.reshape(ns, cin, rows * wp)
    x_flat = jnp.pad(xp, ((0, 0), (0, 0), (wp, sp - wp - rows * wp)))   # top row + tail zeros

    # ---- per-position bias map (constant, built with numpy at trace time) ----
    bias_img = np.asarray(params["bias_img"], np.float32)       # (cout, h, w)
    r_full = -(-so // wp)
    btall = np.zeros((cout, r_full, wp), np.float32)
    for gg in range(g):
        btall[:, gg * (h + 1): gg * (h + 1) + h, :w] = bias_img
    bmap = jnp.asarray(btall.reshape(cout, r_full * wp)[:, :so])

    w_eff = params["w_eff"]                                     # (cout, 9*cin) bf16

    kernel = functools.partial(_high_block_kernel, wp=wp, so=so)
    out = pl.pallas_call(
        kernel,
        out_shape=jax.ShapeDtypeStruct((ns, cout, so), jnp.float32),
        grid=(ns,),
        in_specs=[
            pl.BlockSpec((None, cin, sp), lambda s: (s, 0, 0)),   # padded tall frame
            pl.BlockSpec(w_eff.shape, lambda s: (0, 0)),          # effective conv weight
            pl.BlockSpec((cout, so), lambda s: (0, 0)),           # bias map
        ],
        out_specs=pl.BlockSpec((None, cout, so), lambda s: (s, 0, 0)),
        compiler_params=pltpu.CompilerParams(
            dimension_semantics=("parallel",),     # batch steps shard across TensorCores
            vmem_limit_bytes=32 * 1024 * 1024,
        ),
    )(x_flat, w_eff, bmap)

    # ---- gather the real pixels (drop padded columns / separator rows). NOTE: nothing
    #      else may read `out` directly -- its extra columns/rows contain junk. ----
    r_need = rows - 1
    out_r = out[:, :, : r_need * wp].reshape(ns, cout, r_need, wp)
    imgs = [out_r[:, :, gg * (h + 1): gg * (h + 1) + h, :w] for gg in range(g)]
    y = jnp.stack(imgs, axis=1)                                  # (ns, g, cout, h, w)
    return y.reshape(n, cout, h, w)


# -------------------------- params / folding / reference ------------------------

def make_pt_params(key, in_channel, out_channel, eps=1e-5):
    """PyTorch-layout weights + BN params with deterministic synthetic init."""
    assert in_channel == out_channel * 4
    cmid, cout = out_channel, out_channel * 4
    ks = jax.random.split(key, 6)

    w1 = 0.1 * jax.random.normal(ks[0], (cmid, in_channel, 1, 1), jnp.float32)
    w2 = 0.1 * jax.random.normal(ks[1], (cmid, cmid, 3, 3), jnp.float32)
    w3 = 0.1 * jax.random.normal(ks[2], (cout, cmid, 1, 1), jnp.float32)

    def bn(k, c):
        k1, k2, k3, k4 = jax.random.split(k, 4)
        gamma = 1.0 + 0.1 * jax.random.normal(k1, (c,), jnp.float32)
        beta = 0.1 * jax.random.normal(k2, (c,), jnp.float32)
        mean = 0.1 * jax.random.normal(k3, (c,), jnp.float32)
        var = jax.random.uniform(k4, (c,), jnp.float32, 0.5, 1.5)
        return (gamma, beta, mean, var)

    return {"w1": w1, "w2": w2, "w3": w3,
            "bn1": bn(ks[3], cmid), "bn2": bn(ks[4], cmid), "bn3": bn(ks[5], cout),
            "eps": eps}


def _affine_chain(x, pt):
    """conv1+BN1 -> conv2+BN2 -> conv3+BN3 (no ReLU, no residual) in f32, NCHW."""
    eps = pt["eps"]
    dn = ("NCHW", "OIHW", "NCHW")

    def bn(y, p):
        gamma, beta, mean, var = p
        rs = lambda v: v[None, :, None, None]
        return (y - rs(mean)) / jnp.sqrt(rs(var) + eps) * rs(gamma) + rs(beta)

    y = lax.conv_general_dilated(x, pt["w1"], (1, 1), "VALID", dimension_numbers=dn)
    y = bn(y, pt["bn1"])
    y = lax.conv_general_dilated(y, pt["w2"], (1, 1), ((1, 1), (1, 1)), dimension_numbers=dn)
    y = bn(y, pt["bn2"])
    y = lax.conv_general_dilated(y, pt["w3"], (1, 1), "VALID", dimension_numbers=dn)
    return bn(y, pt["bn3"])


def fold_high_block_params(pt, h, w):
    """Collapse the (linear, ReLU-free) conv/BN chain into one effective 3x3 conv plus a
    per-position bias image (the affine chain evaluated at x == 0)."""
    eps = pt["eps"]

    def sb(p):
        gamma, beta, mean, var = p
        s = gamma / jnp.sqrt(var + eps)
        return s, beta - mean * s

    s1, _ = sb(pt["bn1"]); s2, _ = sb(pt["bn2"]); s3, _ = sb(pt["bn3"])
    w1f = pt["w1"][:, :, 0, 0] * s1[:, None]            # (Cmid, Cin)
    w2f = pt["w2"] * s2[:, None, None, None]            # (Cmid, Cmid, 3, 3)
    w3f = pt["w3"][:, :, 0, 0] * s3[:, None]            # (Cout, Cmid)

    # Effective weight per tap (kh, kw) row-major — matches the kernel's tap order.
    w_eff = jnp.concatenate(
        [w3f @ w2f[:, :, kh, kw] @ w1f for kh in range(3) for kw in range(3)],
        axis=1)                                          # (Cout, 9*Cin)

    # Per-position bias = affine chain at zero input (border-dependent via conv2 padding).
    cin = pt["w1"].shape[1]
    bias_img = _affine_chain(jnp.zeros((1, cin, h, w), jnp.float32), pt)[0]   # (Cout, h, w)

    return {"w_eff": w_eff.astype(jnp.bfloat16),
            "bias_img": np.asarray(bias_img, np.float32)}


def reference_forward(x, pt):
    """Pure-JAX NCHW reference mirroring the PyTorch module (inference-mode BN)."""
    y = jnp.maximum(_affine_chain(x, pt), 0.0)    # ReLU inside the Sequential
    return jnp.maximum(y + x, 0.0)                # identity shortcut + final ReLU


# ----------------------------------- main ---------------------------------------

if __name__ == "__main__":
    N, OUT_CH = 2, 4
    IN_CH = OUT_CH * 4               # 16, required for the identity shortcut
    H = W = 16

    key = jax.random.PRNGKey(0)
    kx, kp = jax.random.split(key)
    x = jax.random.normal(kx, (N, IN_CH, H, W), jnp.float32)   # NCHW like PyTorch

    pt_params = make_pt_params(kp, IN_CH, OUT_CH)
    folded = fold_high_block_params(pt_params, H, W)

    fwd = jax.jit(functools.partial(high_block_forward, params=folded))
    out = jax.block_until_ready(fwd(x))

    ref = jax.block_until_ready(reference_forward(x, pt_params))
    err = float(jnp.max(jnp.abs(out - ref)))
    # bf16 matmul operands (x and the folded weight) with f32 accumulation + f32 epilogue.
    if err > 3e-2:
        raise AssertionError(f"Pallas output mismatch vs reference, max abs err={err}")

    print("KERNEL_OK")
</pallas_src>

<mosaic_0001>
module attributes {stable_mosaic.version = 11 : i64} {
  func.func @_high_block_kernel(%arg0: i32, %arg1: memref<1x16x512xf32, #tpu.memory_space<vmem>>, %arg2: memref<16x144xbf16, #tpu.memory_space<vmem>>, %arg3: memref<16x384xf32, #tpu.memory_space<vmem>>, %arg4: memref<1x16x384xf32, #tpu.memory_space<vmem>>) attributes {dimension_semantics = [#tpu.dimension_semantics<parallel>], iteration_bounds = array<i64: 2>, scalar_prefetch = 0 : i64, scratch_operands = 0 : i64, tpu.core_type = #tpu.core_type<tc>, window_params = [{transform_indices = @transform_0, window_bounds = array<i64: 1, 16, 512>}, {pipeline_mode = #tpu.pipeline_mode<synchronous>, transform_indices = @transform_1, window_bounds = array<i64: 16, 144>}, {pipeline_mode = #tpu.pipeline_mode<synchronous>, transform_indices = @transform_2, window_bounds = array<i64: 16, 384>}, {transform_indices = @transform_3, window_bounds = array<i64: 1, 16, 384>}]} {
    %c0 = arith.constant 0 : index
    %c0_0 = arith.constant 0 : index
    %c0_1 = arith.constant 0 : index
    %0 = vector.load %arg1[%c0, %c0_0, %c0_1] : memref<1x16x512xf32, #tpu.memory_space<vmem>>, vector<1x16x512xf32>
    %1 = vector.shape_cast %0 : vector<1x16x512xf32> to vector<16x512xf32>
    %2 = arith.truncf %1 : vector<16x512xf32> to vector<16x512xbf16>
    %3 = vector.extract_strided_slice %2 {offsets = [0, 0], sizes = [16, 384], strides = [1, 1]} : vector<16x512xbf16> to vector<16x384xbf16>
    %4 = vector.extract_strided_slice %2 {offsets = [0, 1], sizes = [16, 384], strides = [1, 1]} : vector<16x512xbf16> to vector<16x384xbf16>
    %5 = vector.extract_strided_slice %2 {offsets = [0, 2], sizes = [16, 384], strides = [1, 1]} : vector<16x512xbf16> to vector<16x384xbf16>
    %6 = vector.extract_strided_slice %2 {offsets = [0, 18], sizes = [16, 384], strides = [1, 1]} : vector<16x512xbf16> to vector<16x384xbf16>
    %7 = vector.extract_strided_slice %2 {offsets = [0, 19], sizes = [16, 384], strides = [1, 1]} : vector<16x512xbf16> to vector<16x384xbf16>
    %8 = vector.extract_strided_slice %2 {offsets = [0, 20], sizes = [16, 384], strides = [1, 1]} : vector<16x512xbf16> to vector<16x384xbf16>
    %9 = vector.extract_strided_slice %2 {offsets = [0, 36], sizes = [16, 384], strides = [1, 1]} : vector<16x512xbf16> to vector<16x384xbf16>
    %10 = vector.extract_strided_slice %2 {offsets = [0, 37], sizes = [16, 384], strides = [1, 1]} : vector<16x512xbf16> to vector<16x384xbf16>
    %11 = vector.extract_strided_slice %2 {offsets = [0, 38], sizes = [16, 384], strides = [1, 1]} : vector<16x512xbf16> to vector<16x384xbf16>
    %12 = tpu.concatenate %3, %4, %5, %6, %7, %8, %9, %10, %11 in 0 : vector<16x384xbf16>, vector<16x384xbf16>, vector<16x384xbf16>, vector<16x384xbf16>, vector<16x384xbf16>, vector<16x384xbf16>, vector<16x384xbf16>, vector<16x384xbf16>, vector<16x384xbf16> -> vector<144x384xbf16>
    %c0_2 = arith.constant 0 : index
    %c0_3 = arith.constant 0 : index
    %13 = vector.load %arg2[%c0_2, %c0_3] : memref<16x144xbf16, #tpu.memory_space<vmem>>, vector<16x144xbf16>
    %cst = arith.constant dense<0.000000e+00> : vector<16x384xf32>
    %14 = tpu.matmul %13, %12, %cst {dimension_numbers = #tpu.dot_dimension_numbers<[1], [0], [0], [1], [0, 0, 1, 1], [], []>} : vector<16x144xbf16>, vector<144x384xbf16>, vector<16x384xf32> -> vector<16x384xf32>
    %c0_4 = arith.constant 0 : index
    %c0_5 = arith.constant 0 : index
    %15 = vector.load %arg3[%c0_4, %c0_5] : memref<16x384xf32, #tpu.memory_space<vmem>>, vector<16x384xf32>
    %16 = arith.addf %14, %15 : vector<16x384xf32>
    %cst_6 = arith.constant 0.000000e+00 : f32
    %17 = vector.broadcast %cst_6 : f32 to vector<16x384xf32>
    %18 = arith.maximumf %16, %17 : vector<16x384xf32>
    %c0_7 = arith.constant 0 : index
    %c0_8 = arith.constant 0 : index
    %c19 = arith.constant 19 : index
    %19 = vector.load %arg1[%c0_7, %c0_8, %c19] : memref<1x16x512xf32, #tpu.memory_space<vmem>>, vector<1x16x384xf32>
    %20 = vector.shape_cast %19 : vector<1x16x384xf32> to vector<16x384xf32>
    %21 = arith.addf %18, %20 : vector<16x384xf32>
    %cst_9 = arith.constant 0.000000e+00 : f32
    %22 = vector.broadcast %cst_9 : f32 to vector<16x384xf32>
    %23 = arith.maximumf %21, %22 : vector<16x384xf32>
    %c0_10 = arith.constant 0 : index
    %c0_11 = arith.constant 0 : index
    %c0_12 = arith.constant 0 : index
    %24 = vector.load %arg4[%c0_10, %c0_11, %c0_12] : memref<1x16x384xf32, #tpu.memory_space<vmem>>, vector<1x16x384xf32>
    %25 = vector.shape_cast %24 : vector<1x16x384xf32> to vector<16x384xf32>
    %26 = vector.shape_cast %23 : vector<16x384xf32> to vector<1x16x384xf32>
    tpu.vector_store %arg4[%c0_10, %c0_11, %c0_12], %26 {strides = array<i32>} : memref<1x16x384xf32, #tpu.memory_space<vmem>>, vector<1x16x384xf32>,
    return
  }
  func.func @transform_0(%arg0: i32) -> (i32, i32, i32) {
    %c0_i32 = arith.constant 0 : i32
    %c0_i32_0 = arith.constant 0 : i32
    %c0_i32_1 = arith.constant 0 : i32
    return %arg0, %c0_i32, %c0_i32_0 : i32, i32, i32
  }
  func.func @transform_1(%arg0: i32) -> (i32, i32) {
    %c0_i32 = arith.constant 0 : i32
    %c0_i32_0 = arith.constant 0 : i32
    %c0_i32_1 = arith.constant 0 : i32
    return %c0_i32, %c0_i32_0 : i32, i32
  }
  func.func @transform_2(%arg0: i32) -> (i32, i32) {
    %c0_i32 = arith.constant 0 : i32
    %c0_i32_0 = arith.constant 0 : i32
    %c0_i32_1 = arith.constant 0 : i32
    return %c0_i32, %c0_i32_0 : i32, i32
  }
  func.func @transform_3(%arg0: i32) -> (i32, i32, i32) {
    %c0_i32 = arith.constant 0 : i32
    %c0_i32_0 = arith.constant 0 : i32
    %c0_i32_1 = arith.constant 0 : i32
    return %arg0, %c0_i32, %c0_i32_0 : i32, i32, i32
  }
}

</mosaic_0001>

<bundles_post_ra>
// kernel: high_block_forward.1
= control target key start
LH: loop header
LB: loop body
LE: loop exit
PB: predicated region body
PF: predicated region fallthrough
CT: control target
= control target key end

     0   :  { %s602_s12 = smov 0   ;;  %s681_s0 = inlined_call_operand.vmem [shape: f32[2,16,512], index: 0, kind: input, shape index: {}]   ;;  %s682_s1 = inlined_call_operand.vmem [shape: bf16[16,144], index: 1, kind: input, shape index: {}]   ;;  %s683_s2 = inlined_call_operand.vmem [shape: f32[16,384], index: 2, kind: input, shape index: {}]   ;;  %s684_s3 = inlined_call_operand.vmem [shape: f32[2,16,384], index: 3, kind: output, shape index: {}]  }
   0x1 LB: > { %s529_s13 = sadd.s32 4294967295, %s571_s12   ;;  %p533_p0 = scmp.ge.s32.totalorder %s571_s12, 1  ;;  %s571_s12 = sphi %s602_s12, %s13_s12  }
   0x2   : > { %p137_p1 = scmp.lt.s32.totalorder %s571_s12, 3 }
   0x4   : > { %p138_p2 = pnand %p533_p0, %p137_p1 }
   0x5   : > { %p161_p3 = scmp.lt.s32.totalorder (!%p138_p2), %s529_s13, 1  ;;  %v573_v0 = vmov (!%p138_p2), 0   ;;  %s574_s18 = smov (!%p138_p2), 127   ;;  %v564_v13 = vld [vmem:[%s682_s1 + $0x4] ss:$8 sps:$4 sm:$0xff] (!%p138_p2)   ;;  %vm325_vm0 = vcmask (!%p138_p2), 130048  }
   0x6   : > { %141 = sbr.rel (%p138_p2) target bundleno = 423 (0x1a7), region = 32  ;;  %372 = vmatprep.subr.bf16.mxu1 (!%p138_p2), %v573_v0  ;;  %s575_s19 = smov (!%p138_p2), 126   ;;  %539 = vmatprep.mubr.msk.bf16.mxu0 (!%p138_p2), %vm325_vm0, %v564_v13  ;;  %vm196_vm1 = vcmask (!%p138_p2), 1039360   ;;  %vm211_vm2 = vcmask (!%p138_p2), 1031168   ;;  %vm226_vm3 = vcmask (!%p138_p2), 900096   ;;  %vm241_vm4 = vcmask (!%p138_p2), 891904  }
   0x7   : > { %s576_s20 = smov (!%p138_p2), 110   ;;  %s577_s21 = smov (!%p138_p2), 109   ;;  %540 = vmatprep.mubr.msk.bf16.mxu1 (!%p138_p2), %vm325_vm0, %v564_v13  ;;  %vm256_vm5 = vcmask (!%p138_p2), 883712   ;;  %vm271_vm6 = vcmask (!%p138_p2), 752640   ;;  %vm286_vm7 = vcmask (!%p138_p2), 744448   ;;  %vm301_vm8 = vcmask (!%p138_p2), 736256  }
   0x8   : > { %s578_s22 = smov (!%p138_p2), 108   ;;  %s579_s23 = smov (!%p138_p2), 92   ;;  %v310_v13 = vld [vmem:[%s683_s2] sm:$0xff] (!%p138_p2) }
   0x9   : > { %s580_s24 = smov (!%p138_p2), 91   ;;  %s581_s27 = smov (!%p138_p2), 90  }
   0xd   : > { %s686_s13 = smov (!%p161_p3, %s529_s13), 1 }
   0xe   : > { %s543_s14 = sshll.u32 %s686_s13, 6 }
   0xf   : > { %s165_s17 = scalar_lea.vmem %s681_s0, %s543_s14 }
  0x10   : > { %v173_v1 = vld [vmem:[%s165_s17 + $0x8] sm:$0xff]  ;;  %v172_v3 = vld [vmem:[%s165_s17] sm:$0xff]  ;;  %v174_v6 = vld [vmem:[%s165_s17 + $0x10] sm:$0xff] }
  0x11   : > { %v617_v2 = vld [vmem:[%s165_s17 + $0x28] sm:$0xff]  ;;  %v176_v5 = vld [vmem:[%s165_s17 + $0x20] sm:$0xff]  ;;  %v178_v7 = vld [vmem:[%s165_s17 + $0x30] sm:$0xff] }
  0x12   : > { %v181_v4 = vpack.c.bf16 %v617_v2, %v173_v1  ;;  %v180_v8 = vpack.c.bf16 %v176_v5, %v172_v3  ;;  %v182_v9 = vpack.c.bf16 %v178_v7, %v174_v6  ;;  %v175_v10 = vld [vmem:[%s165_s17 + $0x18] sm:$0xff] }
  0x13   : > { %v179_v11 = vld [vmem:[%s165_s17 + $0x38] sm:$0xff]  ;;  %s544_s17 = smul.u32 48, %s686_s13 }
  0x14   : > { %190 = vrot.lane.b32.xlu0 %v181_v4, %s574_s18  ;;  %329 = vmatprep.subr.bf16.mxu0 %v181_v4  ;;  %v183_v12 = vpack.c.bf16 %v179_v11, %v175_v10 }
  0x15   : > { %188 = vrot.lane.b32.xlu1 %v180_v8, %s574_s18  ;;  %373 = vmatpush1.bf16.msra.mxu1 %v182_v9 }
  0x16   : > { %330 = vmatpush1.bf16.msra.mxu0 %v180_v8  ;;  %374 = vmatprep.subr.bf16.mxu1 %v573_v0 }
  0x18   : > { %192 = vrot.lane.b32.xlu0 %v182_v9, %s574_s18 }
  0x19   : > { %194 = vrot.lane.b32.xlu1 %v183_v12, %s574_s18 }
  0x1c   : > { %205 = vrot.lane.b32.xlu0 %v181_v4, %s575_s19 }
  0x1d   : > { %207 = vrot.lane.b32.xlu1 %v182_v9, %s575_s19 }
  0x20   : > { %203 = vrot.lane.b32.xlu0 %v180_v8, %s575_s19 }
  0x21   : > { %209 = vrot.lane.b32.xlu1 %v183_v12, %s575_s19  ;;  %s170_s19 = scalar_lea.vmem %s684_s3, %s544_s17 }
  0x24   : > { %220 = vrot.lane.b32.xlu0 %v181_v4, %s576_s20 }
  0x25   : > { %222 = vrot.lane.b32.xlu1 %v182_v9, %s576_s20 }
  0x28   : > { %218 = vrot.lane.b32.xlu0 %v180_v8, %s576_s20 }
  0x29   : > { %224 = vrot.lane.b32.xlu1 %v183_v12, %s576_s20 }
  0x2c   : > { %235 = vrot.lane.b32.xlu0 %v181_v4, %s577_s21 }
  0x2d   : > { %237 = vrot.lane.b32.xlu1 %v182_v9, %s577_s21 }
  0x30   : > { %233 = vrot.lane.b32.xlu0 %v180_v8, %s577_s21 }
  0x31   : > { %239 = vrot.lane.b32.xlu1 %v183_v12, %s577_s21 }
  0x34   : > { %250 = vrot.lane.b32.xlu0 %v181_v4, %s578_s22 }
  0x35   : > { %252 = vrot.lane.b32.xlu1 %v182_v9, %s578_s22 }
  0x38   : > { %248 = vrot.lane.b32.xlu0 %v180_v8, %s578_s22 }
  0x39   : > { %254 = vrot.lane.b32.xlu1 %v183_v12, %s578_s22 }
  0x3c   : > { %265 = vrot.lane.b32.xlu0 %v181_v4, %s579_s23 }
  0x3d   : > { %267 = vrot.lane.b32.xlu1 %v182_v9, %s579_s23 }
  0x40   : > { %263 = vrot.lane.b32.xlu0 %v180_v8, %s579_s23 }
  0x41   : > { %269 = vrot.lane.b32.xlu1 %v183_v12, %s579_s23 }
  0x44   : > { %280 = vrot.lane.b32.xlu0 %v181_v4, %s580_s24 }
  0x45   : > { %282 = vrot.lane.b32.xlu1 %v182_v9, %s580_s24 }
  0x48   : > { %278 = vrot.lane.b32.xlu0 %v180_v8, %s580_s24 }
  0x49   : > { %284 = vrot.lane.b32.xlu1 %v183_v12, %s580_s24 }
  0x4c   : > { %295 = vrot.lane.b32.xlu0 %v181_v4, %s581_s27 }
  0x4d   : > { %297 = vrot.lane.b32.xlu1 %v182_v9, %s581_s27 }
  0x50   : > { %293 = vrot.lane.b32.xlu0 %v180_v8, %s581_s27 }
  0x51   : > { %299 = vrot.lane.b32.xlu1 %v183_v12, %s581_s27 }
  0x54   : > { %427 = vrot.lane.b32.xlu0 %v172_v3, %s577_s21 }
  0x55   : > { %429 = vrot.lane.b32.xlu1 %v173_v1, %s577_s21 }
  0x58   : > { %431 = vrot.lane.b32.xlu0 %v174_v6, %s577_s21  ;;  %v562_v6 = vld [vmem:[%s682_s1] ss:$8 sps:$4 sm:$0xff]  }
  0x59   : > { %433 = vrot.lane.b32.xlu1 %v175_v10, %s577_s21 }
  0x5c   : > { %435 = vrot.lane.b32.xlu0 %v176_v5, %s577_s21 }
  0x5d   : > { %437 = vrot.lane.b32.xlu1 %v617_v2, %s577_s21 }
  0x60   : > { %439 = vrot.lane.b32.xlu0 %v178_v7, %s577_s21 }
  0x61   : > { %441 = vrot.lane.b32.xlu1 %v179_v11, %s577_s21 }
  0x86   : > { %v191_v14 = vpop.permute.xlu0 %190 }
  0x87   : > { %v189_v15 = vpop.permute.xlu1 %188 }
  0x88   : > { %v197_v20 = vsel %vm196_vm1, %v189_v15, %v191_v14  ;;  %v311_v15 = vld [vmem:[%s683_s2 + $0x8] sm:$0xff] }
  0x8a   : > { %v193_v16 = vpop.permute.xlu0 %192 }
  0x8b   : > { %v195_v17 = vpop.permute.xlu1 %194  ;;  %v198_v18 = vsel %vm196_vm1, %v191_v14, %v193_v16  ;;  %v312_v14 = vld [vmem:[%s683_s2 + $0x10] sm:$0xff] }
  0x8c   : > { %331 = vmatprep.subr.bf16.mxu0 %v198_v18  ;;  %v199_v19 = vsel %vm196_vm1, %v193_v16, %v195_v17  ;;  %v313_v17 = vld [vmem:[%s683_s2 + $0x18] sm:$0xff] }
  0x8d   : > { %375 = vmatpush1.bf16.msra.mxu1 %v199_v19  ;;  %332 = vmatpush1.bf16.msra.mxu0 %v197_v20 }
  0x8e   : > { %v206_v21 = vpop.permute.xlu0 %205  ;;  %376 = vmatprep.subr.bf16.mxu1 %v573_v0 }
  0x8f   : > { %v208_v22 = vpop.permute.xlu1 %207 }
  0x90   : > { %v213_v23 = vsel %vm211_vm2, %v206_v21, %v208_v22 }
  0x91   : > { %333 = vmatprep.subr.bf16.mxu0 %v213_v23  ;;  %v314_v23 = vld [vmem:[%s683_s2 + $0x20] sm:$0xff] }
  0x92   : > { %v204_v24 = vpop.permute.xlu0 %203 }
  0x93   : > { %v210_v25 = vpop.permute.xlu1 %209  ;;  %v212_v26 = vsel %vm211_vm2, %v204_v24, %v206_v21 }
  0x94   : > { %334 = vmatpush1.bf16.msra.mxu0 %v212_v26  ;;  %v214_v27 = vsel %vm211_vm2, %v208_v22, %v210_v25  ;;  %v315_v22 = vld [vmem:[%s683_s2 + $0x28] sm:$0xff] }
  0x95   : > { %377 = vmatpush1.bf16.msra.mxu1 %v214_v27 }
  0x96   : > { %v221_v28 = vpop.permute.xlu0 %220  ;;  %378 = vmatprep.subr.bf16.mxu1 %v573_v0 }
  0x97   : > { %v223_v29 = vpop.permute.xlu1 %222 }
  0x98   : > { %v228_v30 = vsel %vm226_vm3, %v221_v28, %v223_v29 }
  0x99   : > { %335 = vmatprep.subr.bf16.mxu0 %v228_v30 }
  0x9a   : > { %v219_v31 = vpop.permute.xlu0 %218 }
  0x9b   : > { %v225_v32 = vpop.permute.xlu1 %224  ;;  %v227_v33 = vsel %vm226_vm3, %v219_v31, %v221_v28 }
  0x9c   : > { %336 = vmatpush1.bf16.msra.mxu0 %v227_v33  ;;  %v229_v34 = vsel %vm226_vm3, %v223_v29, %v225_v32 }
  0x9d   : > { %379 = vmatpush1.bf16.msra.mxu1 %v229_v34 }
  0x9e   : > { %v236_v35 = vpop.permute.xlu0 %235  ;;  %380 = vmatprep.subr.bf16.mxu1 %v573_v0 }
  0x9f   : > { %v238_v36 = vpop.permute.xlu1 %237 }
  0xa0   : > { %v243_v37 = vsel %vm241_vm4, %v236_v35, %v238_v36 }
  0xa1   : > { %337 = vmatprep.subr.bf16.mxu0 %v243_v37 }
  0xa2   : > { %v234_v38 = vpop.permute.xlu0 %233 }
  0xa3   : > { %v240_v39 = vpop.permute.xlu1 %239  ;;  %v242_v40 = vsel %vm241_vm4, %v234_v38, %v236_v35 }
  0xa4   : > { %338 = vmatpush1.bf16.msra.mxu0 %v242_v40  ;;  %v244_v41 = vsel %vm241_vm4, %v238_v36, %v240_v39 }
  0xa5   : > { %381 = vmatpush1.bf16.msra.mxu1 %v244_v41 }
  0xa6   : > { %v251_v42 = vpop.permute.xlu0 %250  ;;  %382 = vmatprep.subr.bf16.mxu1 %v573_v0 }
  0xa7   : > { %v253_v43 = vpop.permute.xlu1 %252 }
  0xa8   : > { %v258_v44 = vsel %vm256_vm5, %v251_v42, %v253_v43 }
  0xa9   : > { %339 = vmatprep.subr.bf16.mxu0 %v258_v44 }
  0xaa   : > { %v249_v45 = vpop.permute.xlu0 %248 }
  0xab   : > { %v255_v46 = vpop.permute.xlu1 %254  ;;  %v257_v47 = vsel %vm256_vm5, %v249_v45, %v251_v42 }
  0xac   : > { %340 = vmatpush1.bf16.msra.mxu0 %v257_v47  ;;  %v259_v48 = vsel %vm256_vm5, %v253_v43, %v255_v46 }
  0xad   : > { %383 = vmatpush1.bf16.msra.mxu1 %v259_v48 }
  0xae   : > { %v266_v49 = vpop.permute.xlu0 %265  ;;  %384 = vmatprep.subr.bf16.mxu1 %v573_v0 }
  0xaf   : > { %v268_v50 = vpop.permute.xlu1 %267 }
  0xb0   : > { %v273_v51 = vsel %vm271_vm6, %v266_v49, %v268_v50 }
  0xb1   : > { %341 = vmatprep.subr.bf16.mxu0 %v273_v51 }
  0xb2   : > { %v264_v52 = vpop.permute.xlu0 %263 }
  0xb3   : > { %v270_v53 = vpop.permute.xlu1 %269  ;;  %v272_v54 = vsel %vm271_vm6, %v264_v52, %v266_v49 }
  0xb4   : > { %342 = vmatpush1.bf16.msra.mxu0 %v272_v54  ;;  %v274_v55 = vsel %vm271_vm6, %v268_v50, %v270_v53 }
  0xb5   : > { %385 = vmatpush1.bf16.msra.mxu1 %v274_v55 }
  0xb6   : > { %v281_v56 = vpop.permute.xlu0 %280  ;;  %386 = vmatprep.subr.bf16.mxu1 %v573_v0 }
  0xb7   : > { %v283_v57 = vpop.permute.xlu1 %282 }
  0xb8   : > { %v288_v58 = vsel %vm286_vm7, %v281_v56, %v283_v57 }
  0xb9   : > { %343 = vmatprep.subr.bf16.mxu0 %v288_v58 }
  0xba   : > { %v279_v59 = vpop.permute.xlu0 %278 }
  0xbb   : > { %v285_v60 = vpop.permute.xlu1 %284  ;;  %v287_v61 = vsel %vm286_vm7, %v279_v59, %v281_v56 }
  0xbc   : > { %344 = vmatpush1.bf16.msra.mxu0 %v287_v61  ;;  %v289_v62 = vsel %vm286_vm7, %v283_v57, %v285_v60 }
  0xbd   : > { %387 = vmatpush1.bf16.msra.mxu1 %v289_v62 }
  0xbe   : > { %v296_v63 = vpop.permute.xlu0 %295  ;;  %388 = vmatprep.subr.bf16.mxu1 %v573_v0 }
  0xbf   : > { %v298_v1 = vpop.permute.xlu1 %297 }
  0xc0   : > { %v303_v2 = vsel %vm301_vm8, %v296_v63, %v298_v1 }
  0xc1   : > { %345 = vmatprep.subr.bf16.mxu0 %v303_v2 }
  0xc2   : > { %v294_v3 = vpop.permute.xlu0 %293 }
  0xc3   : > { %v300_v4 = vpop.permute.xlu1 %299  ;;  %v302_v5 = vsel %vm301_vm8, %v294_v3, %v296_v63 }
  0xc4   : > { %346 = vmatpush1.bf16.msra.mxu0 %v302_v5  ;;  %v304_v7 = vsel %vm301_vm8, %v298_v1, %v300_v4 }
  0xc5   : > { %389 = vmatpush1.bf16.msra.mxu1 %v304_v7 }
  0xc6   : > { %v428_v9 = vpop.permute.xlu0 %427 }
  0xc7   : > { %362 = vmatmul.mubr.bf16.vlgmr.msra.gmra.mrb[0].mxu0 %v562_v6  ;;  %v430_v8 = vpop.permute.xlu1 %429 }
  0xc8   : > { %405 = vmatmul.mubr.bf16.vlgmr.msra.gmra.mrb[0].mxu1 %v562_v6  ;;  %v444_v24 = vsel %vm241_vm4, %v428_v9, %v430_v8 }
  0xca   : > { %v432_v0 = vpop.permute.xlu0 %431 }
  0xcb   : > { %v434_v10 = vpop.permute.xlu1 %433  ;;  %v445_v29 = vsel %vm241_vm4, %v430_v8, %v432_v0 }
  0xcc   : > { %v446_v30 = vsel %vm241_vm4, %v432_v0, %v434_v10 }
  0xce   : > { %v436_v12 = vpop.permute.xlu0 %435 }
  0xcf   : > { %v438_v11 = vpop.permute.xlu1 %437 }
  0xd0   : > { %v447_v42 = vsel %vm241_vm4, %v436_v12, %v438_v11 }
  0xd2   : > { %v440_v37 = vpop.permute.xlu0 %439 }
  0xd3   : > { %v442_v18 = vpop.permute.xlu1 %441  ;;  %v448_v50 = vsel %vm241_vm4, %v438_v11, %v440_v37 }
  0xd4   : > { %v449_v44 = vsel %vm241_vm4, %v440_v37, %v442_v18 }
 0x19a   : > { %v363_v16 = vpop.f32.mrb[0].mxu0 }
 0x19b   : > { %v364_v19 = vadd.f32 %v363_v16, %v310_v13  ;;  %v406_v20 = vpop.f32.mrb[0].mxu1  ;;  %v365_v21 = vpop.f32.mrb[1].mxu0 }
 0x19c   : > { %v407_v25 = vadd.f32 %v406_v20, %v312_v14  ;;  %v408_v26 = vpop.f32.mrb[1].mxu1  ;;  %v366_v27 = vadd.f32 %v365_v21, %v311_v15  ;;  %v367_v28 = vpop.f32.mrb[2].mxu0 }
 0x19d   : > { %v413_v31 = vmax.f32 %v364_v19, 0.0  ;;  %v368_v32 = vadd.f32 %v367_v28, %v313_v17  ;;  %v409_v33 = vpop.f32.mrb[2].mxu1  ;;  %v369_v34 = vpop.f32.mrb[3].mxu0 }
 0x19e   : > { %v415_v35 = vmax.f32 %v407_v25, 0.0  ;;  %v414_v36 = vmax.f32 %v366_v27, 0.0  ;;  %v410_v38 = vadd.f32 %v409_v33, %v315_v22  ;;  %v370_v39 = vadd.f32 %v369_v34, %v314_v23  ;;  %v411_v40 = vpop.f32.mrb[3].mxu1 }
 0x19f   : > { %v456_v41 = vadd.f32 %v444_v24, %v413_v31  ;;  %v416_v43 = vmax.f32 %v368_v32, 0.0 }
 0x1a0   : > { %v458_v45 = vadd.f32 %v446_v30, %v415_v35  ;;  %v457_v46 = vadd.f32 %v445_v29, %v414_v36  ;;  %v418_v47 = vmax.f32 %v410_v38, 0.0  ;;  %v417_v48 = vmax.f32 %v370_v39, 0.0 }
 0x1a1   : > { %v462_v49 = vmax.f32 %v456_v41, 0.0  ;;  %v459_v51 = vadd.f32 %v447_v42, %v416_v43 }
 0x1a2   : > { %v464_v52 = vmax.f32 %v458_v45, 0.0  ;;  %v463_v53 = vmax.f32 %v457_v46, 0.0  ;;  %v460_v54 = vadd.f32 %v448_v50, %v417_v48  ;;  %v461_v55 = vadd.f32 %v449_v44, %v418_v47 }
 0x1a3   : > { %468 = vst [vmem:[%s170_s19] sm:$0xff] %v462_v49  ;;  %v465_v56 = vmax.f32 %v459_v51, 0.0 }
 0x1a4   : > { %470 = vst [vmem:[%s170_s19 + $0x10] sm:$0xff] %v464_v52  ;;  %469 = vst [vmem:[%s170_s19 + $0x8] sm:$0xff] %v463_v53  ;;  %v466_v57 = vmax.f32 %v460_v54, 0.0  ;;  %v467_v58 = vmax.f32 %v461_v55, 0.0 }
 0x1a5   : > { %471 = vst [vmem:[%s170_s19 + $0x18] sm:$0xff] %v465_v56 }
 0x1a6   : > { %472 = vst [vmem:[%s170_s19 + $0x20] sm:$0xff] %v466_v57  ;;  %473 = vst [vmem:[%s170_s19 + $0x28] sm:$0xff] %v467_v58 }
 0x1a7 PF: > { %s13_s12 = sadd.s32 1, %s571_s12  }
 0x1a8   : > { %p10_p4 = scmp.ge.s32.totalorder %s13_s12, 4  }
 0x1aa   :  { %12 = sbr.rel (!%p10_p4) target bundleno = 1 (0x1), region = 62 }

</bundles_post_ra>
